<compile_context>
chip_gen: v6e
topology: v6e:2x2x1
jax: 0.10.0
libtpu: 0.0.40
codegen_flags: <defaults>
</compile_context>

<pallas_src>
import functools

import jax
import jax.numpy as jnp
from jax import lax
from jax.experimental import pallas as pl
from jax.experimental.pallas import tpu as pltpu


def _layer_norm(v, gamma, beta, eps=1e-5):
    mu = jnp.mean(v, axis=-1, keepdims=True)
    var = jnp.mean((v - mu) ** 2, axis=-1, keepdims=True)
    return (v - mu) * lax.rsqrt(var + eps) * gamma + beta


def stacked_layer_kernel(x_ref, bias_ref, wqkv_ref, wo_ref,
                         w1_ref, b1_ref, w2_ref, b2_ref,
                         ln1_g_ref, ln1_b_ref, ln2_g_ref, ln2_b_ref,
                         out_ref, res_ref):
    """Grid = (batch_blocks [parallel], n_stacks [arbitrary])."""
    layer = pl.program_id(1)
    n_layers = pl.num_programs(1)
    BB, S, D = out_ref.shape
    bf16 = jnp.bfloat16

    # Layer 0 of each batch block: seed the f32 VMEM-resident residual stream.
    @pl.when(layer == 0)
    def _():
        res_ref[...] = x_ref[...].astype(jnp.float32)

    x2d = res_ref[...].reshape(BB * S, D)          # [BB*S, D] f32 residual
    bias = bias_ref[...]                           # [BB, S, S] additive mask bias

    # ---- sublayer 1: pre-LN masked self-attention (scale folded into wq) ----
    h = _layer_norm(x2d, ln1_g_ref[...], ln1_b_ref[...])
    qkv = jnp.dot(h.astype(bf16), wqkv_ref[...],
                  preferred_element_type=jnp.float32)          # [BB*S, 3D]
    q = qkv[:, :D].reshape(BB, S, D)
    k = qkv[:, D:2 * D].reshape(BB, S, D)
    v = qkv[:, 2 * D:].reshape(BB, S, D)

    # transpose-free contraction over the feature axis, bf16 in / f32 acc
    scores = jnp.einsum("bqd,bkd->bqk", q.astype(bf16), k.astype(bf16),
                        preferred_element_type=jnp.float32) + bias

    # numerically-stable softmax over the key axis (exact reciprocal)
    m = jnp.max(scores, axis=-1, keepdims=True)
    p = jnp.exp(scores - m)
    p = p / jnp.sum(p, axis=-1, keepdims=True)

    attn = jnp.einsum("bqk,bkd->bqd", p.astype(bf16), v.astype(bf16),
                      preferred_element_type=jnp.float32).reshape(BB * S, D)
    attn = jnp.dot(attn.astype(bf16), wo_ref[...],
                   preferred_element_type=jnp.float32)
    y = x2d + attn

    # ---- sublayer 2: pre-LN feed-forward ----
    h2 = _layer_norm(y, ln2_g_ref[...], ln2_b_ref[...])
    f = jnp.dot(h2.astype(bf16), w1_ref[...],
                preferred_element_type=jnp.float32) + b1_ref[...]
    f = jnp.maximum(f, 0.0)
    f = jnp.dot(f.astype(bf16), w2_ref[...],
                preferred_element_type=jnp.float32) + b2_ref[...]

    new_x = (y + f).reshape(BB, S, D)
    res_ref[...] = new_x

    # Single lane-dense HBM-visible store, only at the last layer.
    @pl.when(layer == n_layers - 1)
    def _():
        out_ref[...] = new_x.astype(out_ref.dtype)


def stack_2_forward(x, mask, params, n_stacks, *, batch_block=1,
                    matmul_dtype=jnp.bfloat16):
    """stack_2.forward: one fused Pallas call; grid = (batch blocks, layers)."""
    B, S, D = x.shape
    d_ff = params["w1"].shape[1]
    assert B % batch_block == 0
    bb = batch_block

    # Fused QKV weight [D, 3D] with the 1/sqrt(D) softmax scale folded into
    # the wq columns; all matmul weights cast to bf16 once, here.
    scale = 1.0 / jnp.sqrt(jnp.float32(D))
    wqkv = jnp.concatenate(
        [params["wq"] * scale, params["wk"], params["wv"]],
        axis=1).astype(matmul_dtype)
    wo = params["wo"].astype(matmul_dtype)
    w1 = params["w1"].astype(matmul_dtype)
    w2 = params["w2"].astype(matmul_dtype)

    # Additive attention bias built once from the user mask (1.0 = attend).
    bias = jnp.where(mask > 0.0, jnp.float32(0.0), jnp.float32(-1e9))

    def batch_blocked(shape):
        return pl.BlockSpec(shape, lambda b, l: (b,) + (0,) * (len(shape) - 1))

    def resident(shape):  # constant block index -> DMA'd from HBM exactly once
        return pl.BlockSpec(shape, lambda b, l: (0,) * len(shape))

    in_specs = [
        batch_blocked((bb, S, D)),      # x (read only at layer 0)
        batch_blocked((bb, S, S)),      # additive mask bias
        resident((D, 3 * D)),           # wqkv (bf16, scale folded)
        resident((D, D)),               # wo
        resident((D, d_ff)), resident((1, d_ff)),   # w1, b1
        resident((d_ff, D)), resident((1, D)),      # w2, b2
        resident((1, D)), resident((1, D)),         # ln1 gamma/beta
        resident((1, D)), resident((1, D)),         # ln2 gamma/beta
    ]

    return pl.pallas_call(
        stacked_layer_kernel,
        out_shape=jax.ShapeDtypeStruct((B, S, D), x.dtype),
        grid=(B // bb, n_stacks),
        in_specs=in_specs,
        # Constant block index across the layer axis -> output stays resident;
        # written back to HBM once per batch block (after the last layer).
        out_specs=batch_blocked((bb, S, D)),
        scratch_shapes=[pltpu.VMEM((bb, S, D), jnp.float32)],
        compiler_params=pltpu.CompilerParams(
            dimension_semantics=("parallel", "arbitrary"),
            vmem_limit_bytes=48 * 1024 * 1024),
    )(x, bias, wqkv, wo, w1, params["b1"], w2, params["b2"],
      params["ln1_g"], params["ln1_b"], params["ln2_g"], params["ln2_b"])


def make_params(key, d_model, d_ff):
    ks = jax.random.split(key, 6)
    s = 1.0 / jnp.sqrt(jnp.float32(d_model))
    sf = 1.0 / jnp.sqrt(jnp.float32(d_ff))
    return {
        "wq": jax.random.normal(ks[0], (d_model, d_model), jnp.float32) * s,
        "wk": jax.random.normal(ks[1], (d_model, d_model), jnp.float32) * s,
        "wv": jax.random.normal(ks[2], (d_model, d_model), jnp.float32) * s,
        "wo": jax.random.normal(ks[3], (d_model, d_model), jnp.float32) * s,
        "w1": jax.random.normal(ks[4], (d_model, d_ff), jnp.float32) * s,
        "b1": jnp.zeros((1, d_ff), jnp.float32),
        "w2": jax.random.normal(ks[5], (d_ff, d_model), jnp.float32) * sf,
        "b2": jnp.zeros((1, d_model), jnp.float32),
        "ln1_g": jnp.ones((1, d_model), jnp.float32),
        "ln1_b": jnp.zeros((1, d_model), jnp.float32),
        "ln2_g": jnp.ones((1, d_model), jnp.float32),
        "ln2_b": jnp.zeros((1, d_model), jnp.float32),
    }


def reference_forward(x, mask, params, n_stacks, matmul_dtype=jnp.float32):
    """Pure-JAX reference.  matmul_dtype=f32: faithful f32 baseline of the
    module; matmul_dtype=bf16: matches the kernel's mixed-precision math."""
    B, S, D = x.shape
    md = matmul_dtype
    scale = 1.0 / jnp.sqrt(jnp.float32(D))
    wqkv = jnp.concatenate(
        [params["wq"] * scale, params["wk"], params["wv"]], axis=1).astype(md)
    wo = params["wo"].astype(md)
    w1 = params["w1"].astype(md)
    w2 = params["w2"].astype(md)
    bias = jnp.where(mask > 0.0, jnp.float32(0.0), jnp.float32(-1e9))

    def ln(v, g, b, eps=1e-5):
        mu = v.mean(-1, keepdims=True)
        var = ((v - mu) ** 2).mean(-1, keepdims=True)
        return (v - mu) * lax.rsqrt(var + eps) * g + b

    def layer(xx):
        h = ln(xx, params["ln1_g"], params["ln1_b"])
        qkv = jnp.dot(h.reshape(B * S, D).astype(md), wqkv,
                      preferred_element_type=jnp.float32).reshape(B, S, 3 * D)
        q, k, v = qkv[..., :D], qkv[..., D:2 * D], qkv[..., 2 * D:]
        s = jnp.einsum("bqd,bkd->bqk", q.astype(md), k.astype(md),
                       preferred_element_type=jnp.float32) + bias
        p = jax.nn.softmax(s, axis=-1)
        a = jnp.einsum("bqk,bkd->bqd", p.astype(md), v.astype(md),
                       preferred_element_type=jnp.float32)
        a = jnp.dot(a.reshape(B * S, D).astype(md), wo,
                    preferred_element_type=jnp.float32).reshape(B, S, D)
        y = xx + a
        h2 = ln(y, params["ln2_g"], params["ln2_b"])
        f = jnp.dot(h2.reshape(B * S, D).astype(md), w1,
                    preferred_element_type=jnp.float32) + params["b1"]
        f = jnp.maximum(f, 0.0)
        f = jnp.dot(f.astype(md), w2,
                    preferred_element_type=jnp.float32) + params["b2"]
        return y + f.reshape(B, S, D)

    for _ in range(n_stacks):
        x = layer(x)
    return x


if __name__ == "__main__":
    B, S, D, D_FF = 2, 8, 32, 64
    N_STACKS = 3

    key = jax.random.PRNGKey(0)
    kx, kp = jax.random.split(key)

    x = jax.random.normal(kx, (B, S, D), jnp.float32)

    # Padding mask: batch 0 attends to all 8 positions, batch 1 only to the
    # first 6 (1.0 = attend, 0.0 = masked), broadcast to [B, S, S].
    lengths = jnp.array([S, 6], dtype=jnp.int32)
    col = jnp.arange(S)[None, None, :]
    mask = (col < lengths[:, None, None]).astype(jnp.float32)
    mask = jnp.broadcast_to(mask, (B, S, S))

    params = make_params(kp, D, D_FF)

    fwd = jax.jit(functools.partial(stack_2_forward, n_stacks=N_STACKS))
    out = fwd(x, mask, params)
    jax.block_until_ready(out)

    ref_bf16 = reference_forward(x, mask, params, N_STACKS,
                                 matmul_dtype=jnp.bfloat16)
    ref_f32 = reference_forward(x, mask, params, N_STACKS,
                                matmul_dtype=jnp.float32)

    assert out.shape == (B, S, D)
    assert jnp.all(jnp.isfinite(out))
    # Tight check against the numerically-matched (bf16-matmul) reference.
    assert jnp.allclose(out, ref_bf16, rtol=2e-3, atol=2e-3), (
        float(jnp.max(jnp.abs(out - ref_bf16))))
    # Loose check against the faithful f32 module reference (bf16 MXU drift).
    assert jnp.allclose(out, ref_f32, rtol=5e-2, atol=5e-2), (
        float(jnp.max(jnp.abs(out - ref_f32))))
    print("KERNEL_OK")
</pallas_src>

<mosaic_0001>
module attributes {stable_mosaic.version = 11 : i64} {
  func.func @stacked_layer_kernel(%arg0: i32, %arg1: i32, %arg2: memref<1x8x32xf32, #tpu.memory_space<vmem>>, %arg3: memref<1x8x8xf32, #tpu.memory_space<vmem>>, %arg4: memref<32x96xbf16, #tpu.memory_space<vmem>>, %arg5: memref<32x32xbf16, #tpu.memory_space<vmem>>, %arg6: memref<32x64xbf16, #tpu.memory_space<vmem>>, %arg7: memref<1x64xf32, #tpu.memory_space<vmem>>, %arg8: memref<64x32xbf16, #tpu.memory_space<vmem>>, %arg9: memref<1x32xf32, #tpu.memory_space<vmem>>, %arg10: memref<1x32xf32, #tpu.memory_space<vmem>>, %arg11: memref<1x32xf32, #tpu.memory_space<vmem>>, %arg12: memref<1x32xf32, #tpu.memory_space<vmem>>, %arg13: memref<1x32xf32, #tpu.memory_space<vmem>>, %arg14: memref<1x8x32xf32, #tpu.memory_space<vmem>>, %arg15: memref<1x8x32xf32, #tpu.memory_space<vmem>>) attributes {dimension_semantics = [#tpu.dimension_semantics<parallel>, #tpu.dimension_semantics<arbitrary>], iteration_bounds = array<i64: 2, 3>, scalar_prefetch = 0 : i64, scratch_operands = 1 : i64, tpu.core_type = #tpu.core_type<tc>, window_params = [{transform_indices = @transform_0, window_bounds = array<i64: 1, 8, 32>}, {transform_indices = @transform_1, window_bounds = array<i64: 1, 8, 8>}, {pipeline_mode = #tpu.pipeline_mode<synchronous>, transform_indices = @transform_2, window_bounds = array<i64: 32, 96>}, {pipeline_mode = #tpu.pipeline_mode<synchronous>, transform_indices = @transform_3, window_bounds = array<i64: 32, 32>}, {pipeline_mode = #tpu.pipeline_mode<synchronous>, transform_indices = @transform_4, window_bounds = array<i64: 32, 64>}, {pipeline_mode = #tpu.pipeline_mode<synchronous>, transform_indices = @transform_5, window_bounds = array<i64: 1, 64>}, {pipeline_mode = #tpu.pipeline_mode<synchronous>, transform_indices = @transform_6, window_bounds = array<i64: 64, 32>}, {pipeline_mode = #tpu.pipeline_mode<synchronous>, transform_indices = @transform_7, window_bounds = array<i64: 1, 32>}, {pipeline_mode = #tpu.pipeline_mode<synchronous>, transform_indices = @transform_8, window_bounds = array<i64: 1, 32>}, {pipeline_mode = #tpu.pipeline_mode<synchronous>, transform_indices = @transform_9, window_bounds = array<i64: 1, 32>}, {pipeline_mode = #tpu.pipeline_mode<synchronous>, transform_indices = @transform_10, window_bounds = array<i64: 1, 32>}, {pipeline_mode = #tpu.pipeline_mode<synchronous>, transform_indices = @transform_11, window_bounds = array<i64: 1, 32>}, {transform_indices = @transform_12, window_bounds = array<i64: 1, 8, 32>}]} {
    %c0_i32 = arith.constant 0 : i32
    %0 = arith.cmpi eq, %arg1, %c0_i32 : i32
    %1 = arith.extui %0 : i1 to i32
    %c0_i32_0 = arith.constant 0 : i32
    %2 = arith.cmpi ne, %1, %c0_i32_0 : i32
    scf.if %2 {
      %c0_48 = arith.constant 0 : index
      %c0_49 = arith.constant 0 : index
      %c0_50 = arith.constant 0 : index
      %104 = vector.load %arg2[%c0_48, %c0_49, %c0_50] : memref<1x8x32xf32, #tpu.memory_space<vmem>>, vector<1x8x32xf32>
      %c0_51 = arith.constant 0 : index
      %c0_52 = arith.constant 0 : index
      %c0_53 = arith.constant 0 : index
      %105 = vector.load %arg15[%c0_51, %c0_52, %c0_53] : memref<1x8x32xf32, #tpu.memory_space<vmem>>, vector<1x8x32xf32>
      tpu.vector_store %arg15[%c0_51, %c0_52, %c0_53], %104 {strides = array<i32>} : memref<1x8x32xf32, #tpu.memory_space<vmem>>, vector<1x8x32xf32>,
    } else {
    }
    %c0 = arith.constant 0 : index
    %c0_1 = arith.constant 0 : index
    %c0_2 = arith.constant 0 : index
    %3 = vector.load %arg15[%c0, %c0_1, %c0_2] : memref<1x8x32xf32, #tpu.memory_space<vmem>>, vector<1x8x32xf32>
    %4 = vector.shape_cast %3 : vector<1x8x32xf32> to vector<8x32xf32>
    %c0_3 = arith.constant 0 : index
    %c0_4 = arith.constant 0 : index
    %c0_5 = arith.constant 0 : index
    %5 = vector.load %arg3[%c0_3, %c0_4, %c0_5] : memref<1x8x8xf32, #tpu.memory_space<vmem>>, vector<1x8x8xf32>
    %c0_6 = arith.constant 0 : index
    %c0_7 = arith.constant 0 : index
    %6 = vector.load %arg10[%c0_6, %c0_7] : memref<1x32xf32, #tpu.memory_space<vmem>>, vector<1x32xf32>
    %c0_8 = arith.constant 0 : index
    %c0_9 = arith.constant 0 : index
    %7 = vector.load %arg11[%c0_8, %c0_9] : memref<1x32xf32, #tpu.memory_space<vmem>>, vector<1x32xf32>
    %cst = arith.constant dense<0.000000e+00> : vector<8xf32>
    %8 = vector.multi_reduction <add>, %4, %cst [1] : vector<8x32xf32> to vector<8xf32>
    %9 = vector.shape_cast %8 : vector<8xf32> to vector<8x1xf32>
    %cst_10 = arith.constant 3.200000e+01 : f32
    %10 = vector.broadcast %cst_10 : f32 to vector<8x1xf32>
    %11 = arith.divf %9, %10 : vector<8x1xf32>
    %12 = vector.broadcast %11 : vector<8x1xf32> to vector<8x32xf32>
    %13 = arith.subf %4, %12 : vector<8x32xf32>
    %14 = arith.mulf %13, %13 : vector<8x32xf32>
    %cst_11 = arith.constant dense<0.000000e+00> : vector<8xf32>
    %15 = vector.multi_reduction <add>, %14, %cst_11 [1] : vector<8x32xf32> to vector<8xf32>
    %16 = vector.shape_cast %15 : vector<8xf32> to vector<8x1xf32>
    %cst_12 = arith.constant 3.200000e+01 : f32
    %17 = vector.broadcast %cst_12 : f32 to vector<8x1xf32>
    %18 = arith.divf %16, %17 : vector<8x1xf32>
    %19 = vector.broadcast %11 : vector<8x1xf32> to vector<8x32xf32>
    %20 = arith.subf %4, %19 : vector<8x32xf32>
    %cst_13 = arith.constant 9.99999974E-6 : f32
    %21 = vector.broadcast %cst_13 : f32 to vector<8x1xf32>
    %22 = arith.addf %18, %21 : vector<8x1xf32>
    %23 = math.rsqrt %22 : vector<8x1xf32>
    %24 = vector.broadcast %23 : vector<8x1xf32> to vector<8x32xf32>
    %25 = arith.mulf %20, %24 : vector<8x32xf32>
    %26 = vector.broadcast %6 : vector<1x32xf32> to vector<8x32xf32>
    %27 = arith.mulf %25, %26 : vector<8x32xf32>
    %28 = vector.broadcast %7 : vector<1x32xf32> to vector<8x32xf32>
    %29 = arith.addf %27, %28 : vector<8x32xf32>
    %30 = arith.truncf %29 : vector<8x32xf32> to vector<8x32xbf16>
    %c0_14 = arith.constant 0 : index
    %c0_15 = arith.constant 0 : index
    %31 = vector.load %arg4[%c0_14, %c0_15] : memref<32x96xbf16, #tpu.memory_space<vmem>>, vector<32x96xbf16>
    %cst_16 = arith.constant dense<0.000000e+00> : vector<8x96xf32>
    %32 = tpu.matmul %30, %31, %cst_16 {dimension_numbers = #tpu.dot_dimension_numbers<[1], [0], [0], [1], [0, 0, 1, 1], [], []>} : vector<8x32xbf16>, vector<32x96xbf16>, vector<8x96xf32> -> vector<8x96xf32>
    %33 = vector.extract_strided_slice %32 {offsets = [0, 0], sizes = [8, 32], strides = [1, 1]} : vector<8x96xf32> to vector<8x32xf32>
    %34 = vector.shape_cast %33 : vector<8x32xf32> to vector<1x8x32xf32>
    %35 = vector.extract_strided_slice %32 {offsets = [0, 32], sizes = [8, 32], strides = [1, 1]} : vector<8x96xf32> to vector<8x32xf32>
    %36 = vector.shape_cast %35 : vector<8x32xf32> to vector<1x8x32xf32>
    %37 = vector.extract_strided_slice %32 {offsets = [0, 64], sizes = [8, 32], strides = [1, 1]} : vector<8x96xf32> to vector<8x32xf32>
    %38 = vector.shape_cast %37 : vector<8x32xf32> to vector<1x8x32xf32>
    %39 = arith.truncf %34 : vector<1x8x32xf32> to vector<1x8x32xbf16>
    %40 = arith.truncf %36 : vector<1x8x32xf32> to vector<1x8x32xbf16>
    "tpu.trace_start"() <{level = 10 : i32, message = "bqd,bkd->bqk"}> : () -> ()
    %cst_17 = arith.constant dense<0.000000e+00> : vector<1x8x8xf32>
    %41 = tpu.matmul %39, %40, %cst_17 {dimension_numbers = #tpu.dot_dimension_numbers<[2], [2], [1], [1], [0, 0, 0, 1, 1, 1], [0], [0]>} : vector<1x8x32xbf16>, vector<1x8x32xbf16>, vector<1x8x8xf32> -> vector<1x8x8xf32>
    "tpu.trace_stop"() : () -> ()
    %42 = arith.addf %41, %5 : vector<1x8x8xf32>
    %cst_18 = arith.constant dense<0xFF800000> : vector<1x8xf32>
    %43 = vector.multi_reduction <maximumf>, %42, %cst_18 [2] : vector<1x8x8xf32> to vector<1x8xf32>
    %44 = vector.shape_cast %43 : vector<1x8xf32> to vector<1x8x1xf32>
    %45 = vector.broadcast %44 : vector<1x8x1xf32> to vector<1x8x8xf32>
    %46 = arith.subf %42, %45 : vector<1x8x8xf32>
    %47 = math.exp %46 : vector<1x8x8xf32>
    %cst_19 = arith.constant dense<0.000000e+00> : vector<1x8xf32>
    %48 = vector.multi_reduction <add>, %47, %cst_19 [2] : vector<1x8x8xf32> to vector<1x8xf32>
    %49 = vector.shape_cast %48 : vector<1x8xf32> to vector<1x8x1xf32>
    %50 = vector.broadcast %49 : vector<1x8x1xf32> to vector<1x8x8xf32>
    %51 = arith.divf %47, %50 : vector<1x8x8xf32>
    %52 = arith.truncf %51 : vector<1x8x8xf32> to vector<1x8x8xbf16>
    %53 = arith.truncf %38 : vector<1x8x32xf32> to vector<1x8x32xbf16>
    "tpu.trace_start"() <{level = 10 : i32, message = "bqk,bkd->bqd"}> : () -> ()
    %cst_20 = arith.constant dense<0.000000e+00> : vector<1x8x32xf32>
    %54 = tpu.matmul %52, %53, %cst_20 {dimension_numbers = #tpu.dot_dimension_numbers<[2], [1], [1], [2], [0, 0, 0, 1, 1, 2], [0], [0]>} : vector<1x8x8xbf16>, vector<1x8x32xbf16>, vector<1x8x32xf32> -> vector<1x8x32xf32>
    "tpu.trace_stop"() : () -> ()
    %55 = vector.shape_cast %54 : vector<1x8x32xf32> to vector<8x32xf32>
    %56 = arith.truncf %55 : vector<8x32xf32> to vector<8x32xbf16>
    %c0_21 = arith.constant 0 : index
    %c0_22 = arith.constant 0 : index
    %57 = vector.load %arg5[%c0_21, %c0_22] : memref<32x32xbf16, #tpu.memory_space<vmem>>, vector<32x32xbf16>
    %cst_23 = arith.constant dense<0.000000e+00> : vector<8x32xf32>
    %58 = tpu.matmul %56, %57, %cst_23 {dimension_numbers = #tpu.dot_dimension_numbers<[1], [0], [0], [1], [0, 0, 1, 1], [], []>} : vector<8x32xbf16>, vector<32x32xbf16>, vector<8x32xf32> -> vector<8x32xf32>
    %59 = arith.addf %4, %58 : vector<8x32xf32>
    %c0_24 = arith.constant 0 : index
    %c0_25 = arith.constant 0 : index
    %60 = vector.load %arg12[%c0_24, %c0_25] : memref<1x32xf32, #tpu.memory_space<vmem>>, vector<1x32xf32>
    %c0_26 = arith.constant 0 : index
    %c0_27 = arith.constant 0 : index
    %61 = vector.load %arg13[%c0_26, %c0_27] : memref<1x32xf32, #tpu.memory_space<vmem>>, vector<1x32xf32>
    %cst_28 = arith.constant dense<0.000000e+00> : vector<8xf32>
    %62 = vector.multi_reduction <add>, %59, %cst_28 [1] : vector<8x32xf32> to vector<8xf32>
    %63 = vector.shape_cast %62 : vector<8xf32> to vector<8x1xf32>
    %cst_29 = arith.constant 3.200000e+01 : f32
    %64 = vector.broadcast %cst_29 : f32 to vector<8x1xf32>
    %65 = arith.divf %63, %64 : vector<8x1xf32>
    %66 = vector.broadcast %65 : vector<8x1xf32> to vector<8x32xf32>
    %67 = arith.subf %59, %66 : vector<8x32xf32>
    %68 = arith.mulf %67, %67 : vector<8x32xf32>
    %cst_30 = arith.constant dense<0.000000e+00> : vector<8xf32>
    %69 = vector.multi_reduction <add>, %68, %cst_30 [1] : vector<8x32xf32> to vector<8xf32>
    %70 = vector.shape_cast %69 : vector<8xf32> to vector<8x1xf32>
    %cst_31 = arith.constant 3.200000e+01 : f32
    %71 = vector.broadcast %cst_31 : f32 to vector<8x1xf32>
    %72 = arith.divf %70, %71 : vector<8x1xf32>
    %73 = vector.broadcast %65 : vector<8x1xf32> to vector<8x32xf32>
    %74 = arith.subf %59, %73 : vector<8x32xf32>
    %cst_32 = arith.constant 9.99999974E-6 : f32
    %75 = vector.broadcast %cst_32 : f32 to vector<8x1xf32>
    %76 = arith.addf %72, %75 : vector<8x1xf32>
    %77 = math.rsqrt %76 : vector<8x1xf32>
    %78 = vector.broadcast %77 : vector<8x1xf32> to vector<8x32xf32>
    %79 = arith.mulf %74, %78 : vector<8x32xf32>
    %80 = vector.broadcast %60 : vector<1x32xf32> to vector<8x32xf32>
    %81 = arith.mulf %79, %80 : vector<8x32xf32>
    %82 = vector.broadcast %61 : vector<1x32xf32> to vector<8x32xf32>
    %83 = arith.addf %81, %82 : vector<8x32xf32>
    %84 = arith.truncf %83 : vector<8x32xf32> to vector<8x32xbf16>
    %c0_33 = arith.constant 0 : index
    %c0_34 = arith.constant 0 : index
    %85 = vector.load %arg6[%c0_33, %c0_34] : memref<32x64xbf16, #tpu.memory_space<vmem>>, vector<32x64xbf16>
    %cst_35 = arith.constant dense<0.000000e+00> : vector<8x64xf32>
    %86 = tpu.matmul %84, %85, %cst_35 {dimension_numbers = #tpu.dot_dimension_numbers<[1], [0], [0], [1], [0, 0, 1, 1], [], []>} : vector<8x32xbf16>, vector<32x64xbf16>, vector<8x64xf32> -> vector<8x64xf32>
    %c0_36 = arith.constant 0 : index
    %c0_37 = arith.constant 0 : index
    %87 = vector.load %arg7[%c0_36, %c0_37] : memref<1x64xf32, #tpu.memory_space<vmem>>, vector<1x64xf32>
    %88 = vector.broadcast %87 : vector<1x64xf32> to vector<8x64xf32>
    %89 = arith.addf %86, %88 : vector<8x64xf32>
    %cst_38 = arith.constant 0.000000e+00 : f32
    %90 = vector.broadcast %cst_38 : f32 to vector<8x64xf32>
    %91 = arith.maximumf %89, %90 : vector<8x64xf32>
    %92 = arith.truncf %91 : vector<8x64xf32> to vector<8x64xbf16>
    %c0_39 = arith.constant 0 : index
    %c0_40 = arith.constant 0 : index
    %93 = vector.load %arg8[%c0_39, %c0_40] : memref<64x32xbf16, #tpu.memory_space<vmem>>, vector<64x32xbf16>
    %cst_41 = arith.constant dense<0.000000e+00> : vector<8x32xf32>
    %94 = tpu.matmul %92, %93, %cst_41 {dimension_numbers = #tpu.dot_dimension_numbers<[1], [0], [0], [1], [0, 0, 1, 1], [], []>} : vector<8x64xbf16>, vector<64x32xbf16>, vector<8x32xf32> -> vector<8x32xf32>
    %c0_42 = arith.constant 0 : index
    %c0_43 = arith.constant 0 : index
    %95 = vector.load %arg9[%c0_42, %c0_43] : memref<1x32xf32, #tpu.memory_space<vmem>>, vector<1x32xf32>
    %96 = vector.broadcast %95 : vector<1x32xf32> to vector<8x32xf32>
    %97 = arith.addf %94, %96 : vector<8x32xf32>
    %98 = arith.addf %59, %97 : vector<8x32xf32>
    %99 = vector.shape_cast %98 : vector<8x32xf32> to vector<1x8x32xf32>
    %c0_44 = arith.constant 0 : index
    %c0_45 = arith.constant 0 : index
    %c0_46 = arith.constant 0 : index
    %100 = vector.load %arg15[%c0_44, %c0_45, %c0_46] : memref<1x8x32xf32, #tpu.memory_space<vmem>>, vector<1x8x32xf32>
    tpu.vector_store %arg15[%c0_44, %c0_45, %c0_46], %99 {strides = array<i32>} : memref<1x8x32xf32, #tpu.memory_space<vmem>>, vector<1x8x32xf32>,
    %c2_i32 = arith.constant 2 : i32
    %101 = arith.cmpi eq, %arg1, %c2_i32 : i32
    %102 = arith.extui %101 : i1 to i32
    %c0_i32_47 = arith.constant 0 : i32
    %103 = arith.cmpi ne, %102, %c0_i32_47 : i32
    scf.if %103 {
      %c0_48 = arith.constant 0 : index
      %c0_49 = arith.constant 0 : index
      %c0_50 = arith.constant 0 : index
      %104 = vector.load %arg14[%c0_48, %c0_49, %c0_50] : memref<1x8x32xf32, #tpu.memory_space<vmem>>, vector<1x8x32xf32>
      tpu.vector_store %arg14[%c0_48, %c0_49, %c0_50], %99 {strides = array<i32>} : memref<1x8x32xf32, #tpu.memory_space<vmem>>, vector<1x8x32xf32>,
    } else {
    }
    return
  }
  func.func @transform_0(%arg0: i32, %arg1: i32) -> (i32, i32, i32) {
    %c0_i32 = arith.constant 0 : i32
    %c0_i32_0 = arith.constant 0 : i32
    %c0_i32_1 = arith.constant 0 : i32
    return %arg0, %c0_i32, %c0_i32_0 : i32, i32, i32
  }
  func.func @transform_1(%arg0: i32, %arg1: i32) -> (i32, i32, i32) {
    %c0_i32 = arith.constant 0 : i32
    %c0_i32_0 = arith.constant 0 : i32
    %c0_i32_1 = arith.constant 0 : i32
    return %arg0, %c0_i32, %c0_i32_0 : i32, i32, i32
  }
  func.func @transform_2(%arg0: i32, %arg1: i32) -> (i32, i32) {
    %c0_i32 = arith.constant 0 : i32
    %c0_i32_0 = arith.constant 0 : i32
    %c0_i32_1 = arith.constant 0 : i32
    return %c0_i32, %c0_i32_0 : i32, i32
  }
  func.func @transform_3(%arg0: i32, %arg1: i32) -> (i32, i32) {
    %c0_i32 = arith.constant 0 : i32
    %c0_i32_0 = arith.constant 0 : i32
    %c0_i32_1 = arith.constant 0 : i32
    return %c0_i32, %c0_i32_0 : i32, i32
  }
  func.func @transform_4(%arg0: i32, %arg1: i32) -> (i32, i32) {
    %c0_i32 = arith.constant 0 : i32
    %c0_i32_0 = arith.constant 0 : i32
    %c0_i32_1 = arith.constant 0 : i32
    return %c0_i32, %c0_i32_0 : i32, i32
  }
  func.func @transform_5(%arg0: i32, %arg1: i32) -> (i32, i32) {
    %c0_i32 = arith.constant 0 : i32
    %c0_i32_0 = arith.constant 0 : i32
    %c0_i32_1 = arith.constant 0 : i32
    return %c0_i32, %c0_i32_0 : i32, i32
  }
  func.func @transform_6(%arg0: i32, %arg1: i32) -> (i32, i32) {
    %c0_i32 = arith.constant 0 : i32
    %c0_i32_0 = arith.constant 0 : i32
    %c0_i32_1 = arith.constant 0 : i32
    return %c0_i32, %c0_i32_0 : i32, i32
  }
  func.func @transform_7(%arg0: i32, %arg1: i32) -> (i32, i32) {
    %c0_i32 = arith.constant 0 : i32
    %c0_i32_0 = arith.constant 0 : i32
    %c0_i32_1 = arith.constant 0 : i32
    return %c0_i32, %c0_i32_0 : i32, i32
  }
  func.func @transform_8(%arg0: i32, %arg1: i32) -> (i32, i32) {
    %c0_i32 = arith.constant 0 : i32
    %c0_i32_0 = arith.constant 0 : i32
    %c0_i32_1 = arith.constant 0 : i32
    return %c0_i32, %c0_i32_0 : i32, i32
  }
  func.func @transform_9(%arg0: i32, %arg1: i32) -> (i32, i32) {
    %c0_i32 = arith.constant 0 : i32
    %c0_i32_0 = arith.constant 0 : i32
    %c0_i32_1 = arith.constant 0 : i32
    return %c0_i32, %c0_i32_0 : i32, i32
  }
  func.func @transform_10(%arg0: i32, %arg1: i32) -> (i32, i32) {
    %c0_i32 = arith.constant 0 : i32
    %c0_i32_0 = arith.constant 0 : i32
    %c0_i32_1 = arith.constant 0 : i32
    return %c0_i32, %c0_i32_0 : i32, i32
  }
  func.func @transform_11(%arg0: i32, %arg1: i32) -> (i32, i32) {
    %c0_i32 = arith.constant 0 : i32
    %c0_i32_0 = arith.constant 0 : i32
    %c0_i32_1 = arith.constant 0 : i32
    return %c0_i32, %c0_i32_0 : i32, i32
  }
  func.func @transform_12(%arg0: i32, %arg1: i32) -> (i32, i32, i32) {
    %c0_i32 = arith.constant 0 : i32
    %c0_i32_0 = arith.constant 0 : i32
    %c0_i32_1 = arith.constant 0 : i32
    return %arg0, %c0_i32, %c0_i32_0 : i32, i32, i32
  }
}

</mosaic_0001>

<bundles_post_ra>
// kernel: stack_2_forward.1
= control target key start
LH: loop header
LB: loop body
LE: loop exit
PB: predicated region body
PF: predicated region fallthrough
CT: control target
= control target key end

     0   :  { %s1584_s0 = inlined_call_operand.vmem [shape: f32[2,8,32], index: 0, kind: input, shape index: {}]   ;;  %s1585_s1 = inlined_call_operand.vmem [shape: f32[2,8,8], index: 1, kind: input, shape index: {}]   ;;  %s1586_s2 = inlined_call_operand.vmem [shape: bf16[32,96], index: 2, kind: input, shape index: {}]   ;;  %s1587_s3 = inlined_call_operand.vmem [shape: bf16[32,32], index: 3, kind: input, shape index: {}]   ;;  %s1588_s4 = inlined_call_operand.vmem [shape: bf16[32,64], index: 4, kind: input, shape index: {}]   ;;  %s1589_s5 = inlined_call_operand.vmem [shape: f32[1,64], index: 5, kind: input, shape index: {}]   ;;  %s1590_s6 = inlined_call_operand.vmem [shape: bf16[64,32], index: 6, kind: input, shape index: {}]   ;;  %s1591_s7 = inlined_call_operand.vmem [shape: f32[1,32], index: 7, kind: input, shape index: {}]   ;;  %s1592_s8 = inlined_call_operand.vmem [shape: f32[1,32], index: 8, kind: input, shape index: {}]   ;;  %s1593_s9 = inlined_call_operand.vmem [shape: f32[1,32], index: 9, kind: input, shape index: {}]   ;;  %s1594_s10 = inlined_call_operand.vmem [shape: f32[1,32], index: 10, kind: input, shape index: {}]   ;;  %s1595_s11 = inlined_call_operand.vmem [shape: f32[1,32], index: 11, kind: input, shape index: {}]   ;;  %s1596_s12 = inlined_call_operand.hbm [shape: f32[2,8,32], index: 12, kind: output, shape index: {}]  }
   0x1   :  { %1601 = sst [smem:[#allocation12_spill]] %s1584_s0 }
   0x2   :  { %17 = vsyncpa [#allocation4], 0 }
   0x3   :  { %19 = vsyncpa [#allocation4 + $0x1], 0  ;;  %s1355_s21 = smov 0   ;;  %s1357_s22 = smov 0  }
   0x4   :  { %s1359_s23 = smov 0   ;;  %s1361_s24 = smov 0  }
   0x5   :  { %s1363_s25 = smov 0   ;;  %s1365_s26 = smov 0  }
   0x6   :  { %s1367_s27 = smov 0   ;;  %s1369_s28 = smov 0  }
   0x7 LB: > { %1602 = sst [smem:[#allocation6_spill]] %s1275_s26  ;;  %s996_s29 = sadd.s32 4294967295, %s1283_s28   ;;  %s1283_s28 = sphi %s1369_s28, %s25_s28   ;;  %s1279_s27 = sphi %s1367_s27, %s1616_s27   ;;  %s1275_s26 = sphi %s1365_s26, %s1615_s26   ;;  %s1271_s25 = sphi %s1363_s25, %s1614_s25   ;;  %s1267_s24 = sphi %s1361_s24, %s1613_s24   ;;  %s1263_s23 = sphi %s1359_s23, %s1619_s23   ;;  %s1259_s22 = sphi %s1357_s22, %s1618_s22   ;;  %s1255_s21 = sphi %s1355_s21, %s1617_s21  }
   0x8   : > { %1603 = sst [smem:[#allocation7_spill]] %s1279_s27  ;;  %s997_s30 = sadd.s32 4294967294, %s1283_s28  }
   0x9   : > { %s34_s13 = sadd.s32 1, %s1275_s26  ;;  %s37_s14 = sadd.s32 1, %s1279_s27 }
   0xa   : > { %p35_p0 = scmp.ge.s32.totalorder %s34_s13, 3  ;;  %p316_p1 = scmp.ne.s32.totalorder %s1263_s23, %s1259_s22 }
   0xb   : > { %p317_p2 = scmp.eq.s32.totalorder %s996_s29, 5  ;;  %p322_p4 = scmp.ne.s32.totalorder %s1259_s22, %s1255_s21 }
   0xc   : > { %s1621_s13 = smov (%p35_p0, %s34_s13), 0  ;;  %s1623_s14 = smov (!%p35_p0, %s37_s14), %s1279_s27 }
   0xd   : > { %1604 = sst [smem:[#allocation8_spill]] %s1621_s13  ;;  %p1404_p3 = por %p317_p2, %p316_p1 }
   0xe   : > { %p39_p5 = scmp.ge.s32.totalorder %s1623_s14, 2  ;;  %p323_p6 = scmp.eq.s32.totalorder %s997_s30, 5 }
   0xf   : > { %p1000_p7 = scmp.ge.s32.totalorder %s1283_s28, 1  ;;  %p385_p8 = scmp.lt.s32.totalorder %s1283_s28, 7 }
  0x10   : > { %s1625_s14 = smov (%p39_p5, %s1623_s14), 0  ;;  %p1414_p9 = por %p323_p6, %p322_p4 }
  0x11   : > { %1606 = sst [smem:[#allocation9_spill]] %s1625_s14  ;;  %p386_p10 = pnand %p1000_p7, %p385_p8 }
  0x12   : > { %s1607_s16 = scalar_select %p1414_p9, 1, 0 }
  0x13   : > { %s303_s17 = ssub.s32 %s1279_s27, %s1625_s14  ;;  %s306_s18 = sadd.s32 1, %s1263_s23 }
  0x14   : > { %1608 = sst [smem:[#allocation10_spill]] %s1607_s16  ;;  %p304_p11 = scmp.eq.s32.totalorder %s303_s17, 0 }
  0x15   : > { %389 = sbr.rel (%p386_p10) target bundleno = 2300 (0x8fc), region = 68  ;;  %s427_s20 = sand.u32 (!%p386_p10), 1, %s1259_s22  }
  0x16   : > { %s1422_s19 = scalar_select %p304_p11, %s1263_s23, %s306_s18  }
  0x17   : > { %p430_p12 = scmp.lt.s32.totalorder (!%p386_p10), %s1271_s25, 1  ;;  %s1428_s29 = sshll.u32 (!%p386_p10), %s427_s20, 3 }
  0x18   : > { %1609 = sst [smem:[#allocation11_spill]] %s1422_s19  ;;  %s429_s19 = scalar_lea.vmem (!%p386_p10), [#allocation3], %s1428_s29 }
  0x19   : > { %s1610_s0 = sld [smem:[#allocation12_spill]] (!%p386_p10)  ;;  %p1004_p13 = scmp.ne.s32.totalorder (!%p386_p10), %s1267_s24, 0 }
  0x1a   : > { %s431_s30 = scalar_select %p430_p12, %s1271_s25, 1 }
  0x1b   : > { %442 = sbr.rel (%p1004_p13) target bundleno = 34 (0x22), region = 72 }
  0x1c   : > { %s1002_s13 = sshll.u32 %s431_s30, 3 }
  0x1d   : > { %s1437_s27 = scalar_lea.vmem %s1585_s1, %s1002_s13 }
  0x1f   : > { %s433_s14 = scalar_lea.vmem %s1610_s0, %s1002_s13 }
  0x20   : > { %v443_v0 = vld [vmem:[%s433_s14] sm:$0xff]  ;;  %vm444_vm0 = vcmask 261120  }
  0x21   : > { %445 = vst.msk [vmem:[#allocation2] sm:$0xff] %vm444_vm0, %v443_v0 }
  0x22 PF: > { %vm450_vm1 = vcmask 261120   ;;  %v1173_v8 = vld [vmem:[%s1586_s2 + $0x8] sm:$0xff]   ;;  %v1285_v9 = vmov 0.0   ;;  %vm1286_vm2 = vmmov 0   ;;  %v1174_v10 = vld [vmem:[%s1586_s2] sm:$0xff]   ;;  %s1287_s13 = smov 96  }
  0x23   : > { %1050 = vmatprep.subr.bf16.mxu0 %v1285_v9  ;;  %1054 = vmatprep.mubr.msk.bf16.mxu0 %vm1286_vm2, %v1285_v9  ;;  %v1005_v15 = vld [vmem:[%s1592_s8] ss:$0 sm:$0xff]  ;;  %vm589_vm3 = vcmask 64512   ;;  %s1288_s14 = smov 64   ;;  %v1175_v40 = vld [vmem:[%s1587_s3 + $0x8] sm:$0xff]   ;;  %vm607_vm4 = vcmask 1043456  }
  0x24   : > { %1051 = vmatpush3.bf16.msra.mxu0 %v1173_v8  ;;  %1058 = vmatprep.subr.bf16.mxu1 %v1285_v9  ;;  %v1006_v17 = vld [vmem:[%s1593_s9] ss:$0 sm:$0xff]  ;;  %v1177_v0 = vld [vmem:[%s1588_s4 + $0x8] sm:$0xff]   ;;  %vm849_vm5 = vcmask 523264   ;;  %p1027_p0 = scmp.ne.s32.totalorder %s1267_s24, 2 }
  0x25   : > { %1052 = vmatprep.subr.bf16.mxu0 %v1285_v9  ;;  %1060 = vmatprep.mubr.msk.bf16.mxu1 %vm1286_vm2, %v1285_v9  ;;  %v447_v28 = vld [vmem:[%s1437_s27] sm:$0xff] }
  0x26   : > { %v1176_v41 = vld [vmem:[%s1587_s3] sm:$0xff]  }
  0x27   : > { %v1015_v8 = vld [vmem:[%s1594_s10] ss:$0 sm:$0xff] }
  0x28   : > { %v1441_v1 = vld [vmem:[#allocation2] sm:$0xff]  ;;  %1053 = vmatpush3.bf16.msra.mxu0 %v1174_v10 }
  0x29   : > { %v451_v2 = vsel %vm450_vm1, %v1441_v1, 0.0  ;;  %1064 = vmatprep.subr.bf16.mxu0 %v1285_v9 }
  0x2a   : > { %452 = vadd.xlane.f32.xlu0 %v451_v2  ;;  %v1179_v2 = vld [vmem:[%s1590_s6 + $0x18] sm:$0xff]  }
  0xb3   : > { %v453_v3 = vpop.xlane.xlu0 %452 }
  0xb4   : > { %v455_v4 = vmul.f32 0.03125, %v453_v3  ;;  %v1180_v3 = vld [vmem:[%s1590_s6 + $0x10] sm:$0xff]  }
  0xb6   : > { %v456_v5 = vsub.f32 %v1441_v1, %v455_v4 }
  0xb8   : > { %v457_v6 = vmul.f32 %v456_v5, %v456_v5 }
  0xba   : > { %v458_v7 = vsel %vm450_vm1, %v457_v6, 0.0 }
  0xbb   : > { %459 = vadd.xlane.f32.xlu0 %v458_v7 }
 0x144   : > { %v460_v11 = vpop.xlane.xlu0 %459 }
 0x145   : > { %v461_v12 = vmul.f32 0.03125, %v460_v11  ;;  %v1016_v11 = vld [vmem:[%s1595_s11] ss:$0 sm:$0xff] }
 0x147   : > { %v462_v13 = vadd.f32 1e-05, %v461_v12 }
 0x149   : > { %1183 = vrsqrt.f32 %v462_v13 }
 0x156   : > { %v1184_v14 = vpop.eup %1183 }
 0x157   : > { %v464_v16 = vmul.f32 %v1184_v14, %v456_v5 }
 0x159   : > { %v471_v18 = vmul.f32 %v1005_v15, %v464_v16  ;;  %v1181_v15 = vld [vmem:[%s1590_s6 + $0x8] sm:$0xff]   ;;  %v1182_v16 = vld [vmem:[%s1590_s6] sm:$0xff]  }
 0x15b   : > { %v478_v19 = vadd.f32 %v1006_v17, %v471_v18  ;;  %v1017_v17 = vld [vmem:[%s1589_s5] ss:$0 sm:$0xff] }
 0x15d   : > { %v479_v20 = vpack.c.bf16 %v478_v19, %v478_v19 }
 0x15f   : > { %1055 = vmatmul.mubr.msk.bf16.vlgmr.msra.gmra.mxu0 %vm450_vm1, %v479_v20 }
 0x160   : > { %1066 = vmatprep.mubr.msk.bf16.mxu0 %vm1286_vm2, %v1285_v9 }
 0x21f   : > { %v533_v21 = vpop.f32.mrf.mxu0 }
 0x220   : > { %v539_v22 = vpack.c.bf16 %v533_v21, %v533_v21 }
 0x221   : > { %v1056_v23 = vpop.f32.mrf.mxu0 }
 0x222   : > { %541 = vrot.lane.b32.xlu1 %v539_v22, %s1287_s13 }
 0x223   : > { %v536_v24 = vpop.f32.mrf.mxu0 }
 0x225   : > { %v1057_v25 = vpop.f32.mrf.mxu0 }
 0x294   : > { %v542_v26 = vpop.permute.xlu1 %541 }
 0x295   : > { %v547_v27 = vsel %vm450_vm1, %v542_v26, 0 }
 0x296   : > { %1059 = vmatpush3.bf16.xpose.msra.mxu1 %v547_v27 }
 0x297   : > { %1070 = vmatprep.subr.bf16.mxu1 %v1285_v9 }
 0x29d   : > { %1061 = vmatmul.mubr.msk.bf16.vlgmr.msra.gmra.mxu1 %vm450_vm1, %v539_v22 }
 0x29e   : > { %1074 = vmatprep.mubr.msk.bf16.mxu1 %vm1286_vm2, %v1285_v9  ;;  %1071 = vmatpush3.bf16.msra.mxu1 %v1175_v40 }
 0x29f   : > { %1072 = vmatprep.subr.bf16.mxu1 %v1285_v9 }
 0x2a2   : > { %1073 = vmatpush3.bf16.msra.mxu1 %v1176_v41 }
 0x2a3   : > { %1086 = vmatprep.subr.bf16.mxu1 %v1285_v9 }
 0x35d   : > { %v583_v29 = vpop.f32.mrf.mxu1 }
 0x35e   : > { %v584_v30 = vadd.f32 %v583_v29, %v447_v28 }
 0x35f   : > { %v1062_v31 = vpop.f32.mrf.mxu1 }
 0x360   : > { %v590_v32 = vsel %vm589_vm3, %v584_v30, -inf }
 0x361   : > { %591 = vmax.xlane.f32.xlu1 %v590_v32  ;;  %v586_v33 = vpop.f32.mrf.mxu1 }
 0x363   : > { %v1063_v34 = vpop.f32.mrf.mxu1 }
 0x3ea   : > { %v592_v35 = vpop.xlane.xlu1 %591 }
 0x3eb   : > { %v593_v36 = vsub.f32 %v584_v30, %v592_v35 }
 0x3ed   : > { %v594_v37 = vmul.f32 1.442695, %v593_v36 }
 0x3ef   : > { %1185 = vpow2.f32 %v594_v37 }
 0x3fc   : > { %v1186_v38 = vpop.eup %1185 }
 0x3fd   : > { %v596_v39 = vsel %vm589_vm3, %v1186_v38, 0.0 }
 0x3fe   : > { %597 = vadd.xlane.f32.xlu0 %v596_v39 }
 0x414   : > { %602 = vrot.lane.b32.xlu0 %v539_v22, %s1288_s14 }
 0x487   : > { %v598_v42 = vpop.xlane.xlu0 %597 }
 0x488   : > { %1187 = vrcp.f32 %v598_v42 }
 0x48b   : > { %v603_v43 = vpop.permute.xlu0 %602 }
 0x48c   : > { %v609_v44 = vsel %vm607_vm4, %v603_v43, 0 }
 0x48d   : > { %1065 = vmatpush3.bf16.msra.mxu0 %v609_v44 }
 0x48e   : > { %1078 = vmatprep.subr.bf16.mxu0 %v1285_v9 }
 0x495   : > { %v1188_v45 = vpop.eup %1187 }
 0x496   : > { %v600_v46 = vmul.f32 %v1188_v45, %v1186_v38 }
 0x498   : > { %v601_v47 = vpack.c.bf16 %v600_v46, %v600_v46 }
 0x49a   : > { %1067 = vmatmul.mubr.msk.bf16.vlgmr.msra.gmra.mxu0 %vm589_vm3, %v601_v47 }
 0x49b   : > { %1082 = vmatprep.mubr.msk.bf16.mxu0 %vm1286_vm2, %v1285_v9  ;;  %1079 = vmatpush3.bf16.msra.mxu0 %v1177_v0 }
 0x49c   : > { %1080 = vmatprep.subr.bf16.mxu0 %v1285_v9 }
 0x55a   : > { %v645_v48 = vpop.f32.mrf.mxu0 }
 0x55b   : > { %v651_v49 = vpack.c.bf16 %v645_v48, %v645_v48 }
 0x55c   : > { %v1068_v50 = vpop.f32.mrf.mxu0 }
 0x55d   : > { %1075 = vmatmul.mubr.msk.bf16.vlgmr.msra.gmra.mxu1 %vm450_vm1, %v651_v49 }
 0x55e   : > { %v648_v51 = vpop.f32.mrf.mxu0  ;;  %1094 = vmatprep.mubr.msk.bf16.mxu1 %vm1286_vm2, %v1285_v9  ;;  %1087 = vmatpush3.bf16.msra.mxu1 %v1179_v2 }
 0x55f   : > { %1088 = vmatprep.subr.bf16.mxu1 %v1285_v9 }
 0x560   : > { %v1069_v52 = vpop.f32.mrf.mxu0 }
 0x562   : > { %1089 = vmatpush3.bf16.msra.mxu1 %v1180_v3 }
 0x563   : > { %1090 = vmatprep.subr.bf16.mxu1 %v1285_v9 }
 0x566   : > { %1091 = vmatpush3.bf16.msra.mxu1 %v1181_v15 }
 0x567   : > { %1092 = vmatprep.subr.bf16.mxu1 %v1285_v9  ;;  %v1021_v9 = vld [vmem:[%s1591_s7] ss:$0 sm:$0xff] }
 0x56a   : > { %1093 = vmatpush3.bf16.msra.mxu1 %v1182_v16 }
 0x61d   : > { %v705_v53 = vpop.f32.mrf.mxu1 }
 0x61e   : > { %v711_v54 = vadd.f32 %v705_v53, %v1441_v1  ;;  %v1178_v1 = vld [vmem:[%s1588_s4] sm:$0xff]  }
 0x61f   : > { %v1076_v55 = vpop.f32.mrf.mxu1  ;;  %1081 = vmatpush3.bf16.msra.mxu0 %v1178_v1 }
 0x620   : > { %v714_v56 = vsel %vm450_vm1, %v711_v54, 0.0 }
 0x621   : > { %715 = vadd.xlane.f32.xlu0 %v714_v56  ;;  %v708_v57 = vpop.f32.mrf.mxu1 }
 0x623   : > { %v1077_v58 = vpop.f32.mrf.mxu1 }
 0x6aa   : > { %v716_v59 = vpop.xlane.xlu0 %715 }
 0x6ab   : > { %v717_v60 = vmul.f32 0.03125, %v716_v59 }
 0x6ad   : > { %v718_v61 = vsub.f32 %v711_v54, %v717_v60 }
 0x6af   : > { %v719_v62 = vmul.f32 %v718_v61, %v718_v61 }
 0x6b1   : > { %v720_v63 = vsel %vm450_vm1, %v719_v62, 0.0 }
 0x6b2   : > { %721 = vadd.xlane.f32.xlu1 %v720_v63 }
 0x73b   : > { %v722_v4 = vpop.xlane.xlu1 %721 }
 0x73c   : > { %v723_v5 = vmul.f32 0.03125, %v722_v4 }
 0x73e   : > { %v724_v6 = vadd.f32 1e-05, %v723_v5 }
 0x740   : > { %1189 = vrsqrt.f32 %v724_v6 }
 0x74d   : > { %v1190_v7 = vpop.eup %1189 }
 0x74e   : > { %v726_v10 = vmul.f32 %v1190_v7, %v718_v61 }
 0x750   : > { %v733_v12 = vmul.f32 %v1015_v8, %v726_v10 }
 0x752   : > { %v740_v13 = vadd.f32 %v1016_v11, %v733_v12 }
 0x754   : > { %v741_v14 = vpack.c.bf16 %v740_v13, %v740_v13 }
 0x756   : > { %1083 = vmatmul.mubr.msk.bf16.vlgmr.msra.gmra.mxu0 %vm450_vm1, %v741_v14 }
 0x816   : > { %v802_v18 = vpop.f32.mrf.mxu0 }
 0x817   : > { %v803_v19 = vadd.f32 %v1017_v17, %v802_v18 }
 0x818   : > { %v1084_v20 = vpop.f32.mrf.mxu0 }
 0x819   : > { %v808_v21 = vmax.f32 %v803_v19, 0.0 }
 0x81a   : > { %v805_v22 = vpop.f32.mrf.mxu0 }
 0x81b   : > { %v809_v23 = vpack.c.bf16 %v808_v21, %v808_v21 }
 0x81c   : > { %v1085_v24 = vpop.f32.mrf.mxu0 }
 0x81d   : > { %1095 = vmatmul.mubr.msk.bf16.vlgmr.msra.gmra.mxu1 %vm849_vm5, %v809_v23 }
 0x8dd   : > { %v887_v25 = vpop.f32.mrf.mxu1 }
 0x8de   : > { %v888_v26 = vadd.f32 %v1021_v9, %v887_v25 }
 0x8df   : > { %v1096_v27 = vpop.f32.mrf.mxu1  ;;  %898 = sbr.rel (%p1027_p0) target bundleno = 2277 (0x8e5), region = 76 }
 0x8e0   : > { %v893_v28 = vadd.f32 %v888_v26, %v711_v54 }
 0x8e1   : > { %v890_v29 = vpop.f32.mrf.mxu1 }
 0x8e2   : > { %894 = vst.msk [vmem:[#allocation2] sm:$0xff] %vm450_vm1, %v893_v28 }
 0x8e3   : > { %v1097_v30 = vpop.f32.mrf.mxu1 }
 0x8e4   : > { %899 = vst.msk [vmem:[%s429_s19] sm:$0xff] %vm450_vm1, %v893_v28 }
 0x8e5 PF: > { %s1029_s27 = sshll.u32 %s1271_s25, 7  ;;  %s914_s18 = sshll.u32 %s429_s19, 4  ;;  %s915_s18 = int_to_ptr.vmem [resolvable:$true] %s914_s18 }
 0x8e6   : > { %s912_s17 = scalar_lea.hbm %s1596_s12, %s1029_s27  ;;  %s901_s24 = scalar_lea.sflag [#allocation4], %s427_s20 }
 0x8e7   : > { %s1191_s26 = scalar_lea.vmem %s915_s18, 128  ;;  %s1289_s13 = smov [#allocation3]  }
 0x8e8   : > { %p1192_p1 = scmp.ne.s32.totalorder %s915_s18, %s1191_s26  ;;  %s1195_s14 = sshll.u32 %s1289_s13, 4  ;;  %s1196_s14 = int_to_ptr.vmem [resolvable:$false] %s1195_s14 }
 0x8e9   : > { %s1197_s0 = scalar_lea.vmem %s1196_s14, 256  ;;  %p1198_p5 = scmp.lt.s32.totalorder %s915_s18, %s1196_s14 }
 0x8ea   : > { %p1193_p2 = pnand %p1192_p1, %p1404_p3  ;;  %p1199_p6 = scmp.lt.s32.totalorder %s1197_s0, %s1191_s26 }
 0x8ec   : > { %p1194_p4 = pneg %p1193_p2  ;;  %p1200_p7 = por %p1199_p6, %p1198_p5 }
 0x8ee   : > { %p1201_p8 = pnand %p1200_p7, %p1194_p4 }
 0x8f0   : > { %1204 = shalt.err (!%p1201_p8)
}
 0x8f1   : > { %s1205_s25 = scalar_lea.hbm %s912_s17, 128  ;;  %s1209_s29 = scalar_lea.hbm %s1596_s12, 256 }
 0x8f2   : > { %p1206_p10 = scmp.ne.s32.totalorder %s912_s17, %s1205_s25  ;;  %p1210_p13 = scmp.lt.s32.totalorder %s912_s17, %s1596_s12 }
 0x8f3   : > { %p1211_p0 = scmp.lt.s32.totalorder %s1209_s29, %s1205_s25 }
 0x8f4   : > { %p1207_p11 = pnand %p1206_p10, %p1404_p3 }
 0x8f5   : > { %p1212_p1 = por %p1211_p0, %p1210_p13 }
 0x8f6   : > { %p1208_p12 = pneg %p1207_p11 }
 0x8f8   : > { %p1213_p2 = pnand %p1212_p1, %p1208_p12 }
 0x8fa   : > { %1216 = shalt.err (!%p1213_p2)
}
 0x8fb   : > { %1098 = dma.vmem_to_hbm [thread:$0]  (%p1404_p3), %s915_s18, 128, %s912_s17, %s901_s24  }
 0x8fc PF: > { %p1104_p4 = scmp.ge.s32.totalorder %s1283_s28, 2  ;;  %s926_s30 = sand.u32 1, %s1255_s21  }
 0x8fd   : > { %s927_s26 = scalar_lea.sflag [#allocation4], %s926_s30 }
 0x8fe   : > { %p1101_p5 = pnand %p1104_p4, %p1414_p9 }
 0x900   : > { %p1102_p6 = pneg %p1101_p5 }
 0x902   : > { %1250 = dma.done.wait (%p1102_p6), %s927_s26, 128  }
 0x903   : > { %1252 = vsyncadd (%p1102_p6), %s927_s26, 4294967168  ;;  %s25_s28 = sadd.s32 1, %s1283_s28   ;;  %s1612_s13 = sld [smem:[#allocation11_spill]] }
 0x904   : > { %p22_p7 = scmp.ge.s32.totalorder %s25_s28, 8   ;;  %s1613_s24 = sld [smem:[#allocation6_spill]] }
 0x905   : > { %s1614_s25 = sld [smem:[#allocation7_spill]]  ;;  %s1617_s21 = smov %s1259_s22 }
 0x906   : > { %s1615_s26 = sld [smem:[#allocation8_spill]]  ;;  %s1618_s22 = smov %s1263_s23 }
 0x907   : > { %s1616_s27 = sld [smem:[#allocation9_spill]]  ;;  %24 = sbr.rel (!%p22_p7) target bundleno = 7 (0x7), region = 114 }
 0x909   : > { %s1619_s23 = smov %s1612_s13 }
 0x90c   :  { %932 = vsyncpa [#allocation4], 1 }
 0x90d   :  { %934 = vsyncpa [#allocation4 + $0x1], 1 }

</bundles_post_ra>
